<compile_context>
chip_gen: v5e
topology: v5e:2x2
jax: 0.10.0
libtpu: 0.0.40
codegen_flags: <defaults>
</compile_context>

<pallas_src>
import functools
import math

import jax
import jax.numpy as jnp
from jax import lax
from jax.experimental import pallas as pl
from jax.experimental.pallas import tpu as pltpu


def _round_up(x, m):
    return (x + m - 1) // m * m


def _cdiv(a, b):
    return -(-a // b)


def _tree_add(vals):
    """Balanced-tree sum of same-shaped arrays (keeps the VPU dep chain short)."""
    vals = list(vals)
    while len(vals) > 1:
        nxt = [vals[i] + vals[i + 1] for i in range(0, len(vals) - 1, 2)]
        if len(vals) % 2:
            nxt.append(vals[-1])
        vals = nxt
    return vals[0]


def _label_smoothing_kernel(target_ref, x_ref, partial_ref, *,
                            padding_idx, smooth_val, confidence):
    x = x_ref[...].astype(jnp.float32)   # (TN, V); upcast is a no-op for f32 input
    tgt = target_ref[...]                # (TN, 1) int32
    tn, v = x.shape

    col = lax.broadcasted_iota(jnp.int32, (1, v), 1)                  # (1, V)
    # Column-only base weights: 0 at the padding column, smooth elsewhere.
    base = jnp.where(col == padding_idx,
                     jnp.float32(0.0), jnp.float32(smooth_val))       # (1, V)
    # Scatter of `confidence` at the target column (applied AFTER the padding
    # column zero, exactly like the spec's scatter_).
    td = jnp.where(col == tgt, jnp.float32(confidence), base)         # (TN, V)

    prod = td * x                                                     # (TN, V)
    # Row-group reduce: (TN, V) -> (8, V); pure VPU adds of aligned (8,128) tiles.
    rr = jnp.sum(prod.reshape(tn // 8, 8, v), axis=0)
    # Lane-group reduce on the already row-reduced (8, V): vreg-aligned 128-wide
    # slices summed with a tree -> (8, 128).  VPU only, no XLU, tiny writeback.
    partial_ref[...] = _tree_add(
        [rr[:, g * 128:(g + 1) * 128] for g in range(v // 128)])


def _pick_block_n(n, v, budget_bytes=8 << 20):
    """Rows per block: multiple of 8, ~budget_bytes of f32 x per tile, and an
    even number of blocks when possible (v7x runs the parallel grid on 2 TCs;
    costs nothing on single-TC v5e/v6e)."""
    max_rows = max(8, (budget_bytes // (v * 4)) // 8 * 8)
    block_n = min(max_rows, _round_up(n, 8))
    num_blocks = _cdiv(n, block_n)
    if num_blocks % 2 == 1 and n > 8:
        cand = _round_up(_cdiv(n, num_blocks + 1), 8)
        if cand >= 8 and _cdiv(n, cand) % 2 == 0:
            block_n = cand
    return block_n


def label_smoothing_loss(x, target, *, size, padding_idx, smoothing,
                         block_n=None, use_bf16=False, x_buffer_count=2):
    """x: (N, size) float32 log-probs; target: (N,) int class ids. Scalar loss."""
    n, v = x.shape
    assert v == size
    # TODO(synk): vocab sizes that are not multiples of 128 need lane padding
    # with zeroed base weights; real vocabs are multiples of 128.
    assert v % 128 == 0, "vocab size must be a multiple of 128 (pad it outside)"

    confidence = 1.0 - smoothing
    smooth_val = smoothing / (size - 2)

    if block_n is None:
        block_n = _pick_block_n(n, v)
    assert block_n % 8 == 0, block_n

    # Pad the token axis with zero rows so block_n never collapses to a small
    # divisor of n: padded rows contribute td * 0 == 0 inside the kernel and the
    # constant term below only uses the original, unpadded target.
    n_pad = _round_up(n, block_n)
    num_blocks = n_pad // block_n

    xk = x.astype(jnp.bfloat16) if use_bf16 else x
    tgt_i32 = target.astype(jnp.int32)
    if n_pad != n:
        xk = jnp.pad(xk, ((0, n_pad - n), (0, 0)))
        tgt_pad = jnp.pad(tgt_i32, (0, n_pad - n), constant_values=padding_idx)
    else:
        tgt_pad = tgt_i32
    target2d = tgt_pad.reshape(n_pad, 1)

    kernel = functools.partial(
        _label_smoothing_kernel,
        padding_idx=padding_idx, smooth_val=smooth_val, confidence=confidence)

    # Deeper buffering of the x stream is opt-in (useful on v7x when the tile
    # has to stay small to respect its 64 MiB VMEM per TensorCore).
    x_spec_kwargs = {}
    if x_buffer_count != 2:
        x_spec_kwargs["pipeline_mode"] = pl.Buffered(x_buffer_count)
    x_spec = pl.BlockSpec((block_n, v), lambda i: (i, 0), **x_spec_kwargs)

    itemsize = 2 if use_bf16 else 4
    tile_bytes = block_n * v * itemsize
    # Double-buffered x + in-kernel f32 temporaries + slack.  v5e's scoped
    # default is only 16 MiB, v6e/v7x 32 MiB; cap at 64 MiB (on v7x keep x
    # tiles <= ~12 MiB since VMEM is 64 MiB per TensorCore).
    vmem_limit = int(max(32 << 20,
                         min(2 * tile_bytes + 2 * block_n * v * 4 + (4 << 20),
                             64 << 20)))

    partials = pl.pallas_call(
        kernel,
        out_shape=jax.ShapeDtypeStruct((num_blocks * 8, 128), jnp.float32),
        grid_spec=pltpu.PrefetchScalarGridSpec(
            num_scalar_prefetch=0,
            grid=(num_blocks,),
            in_specs=[
                pl.BlockSpec((block_n, 1), lambda i: (i, 0)),    # target
                x_spec,                                          # x log-probs
            ],
            out_specs=pl.BlockSpec((8, 128), lambda i: (i, 0)),  # (8,128) partials
        ),
        compiler_params=pltpu.CompilerParams(
            dimension_semantics=("parallel",),   # independent blocks (megacore)
            vmem_limit_bytes=vmem_limit),
        cost_estimate=pl.CostEstimate(
            flops=5 * n_pad * v,
            transcendentals=0,
            bytes_accessed=n_pad * v * itemsize + n_pad * 4
                           + num_blocks * 8 * 128 * 4),
    )(target2d, xk)

    # Constant SUM(td * log td) term, hoisted out of the kernel.  Per row:
    #   confidence*log(confidence) + k*smooth*log(smooth)
    # with k = size-2 normally and k = size-1 when target == padding_idx (the
    # scatter overrides the zeroed padding column, exactly as in the spec).
    conf_log = confidence * math.log(confidence) if confidence > 0.0 else 0.0
    smooth_log = smooth_val * math.log(smooth_val) if smooth_val > 0.0 else 0.0
    k = jnp.where(tgt_i32 == padding_idx, size - 1, size - 2).astype(jnp.float32)
    const_term = n * conf_log + jnp.sum(k) * smooth_log

    # Kernel stores +SUM(td*x) partials; the subtraction happens here (one
    # fewer VPU op per element on the hot path).
    return const_term - jnp.sum(partials)


def _reference(x, target, *, size, padding_idx, smoothing):
    """Pure-JAX reference mirroring the PyTorch forward."""
    confidence = 1.0 - smoothing
    n = x.shape[0]
    td = jnp.full((n, size), smoothing / (size - 2), jnp.float32)
    td = td.at[:, padding_idx].set(0.0)
    td = td.at[jnp.arange(n), target].set(confidence)
    safe = jnp.where(td > 0, td, 1.0)
    return jnp.sum(jnp.where(td > 0, td * (jnp.log(safe) - x), 0.0))


if __name__ == "__main__":
    key = jax.random.PRNGKey(0)
    N, V = 64, 256                 # 64 tokens, vocab 256 (multiple of 128)
    padding_idx = 0
    smoothing = 0.1

    k1, k2 = jax.random.split(key)
    logits = jax.random.normal(k1, (N, V), jnp.float32)
    x = jax.nn.log_softmax(logits, axis=-1)            # KLDivLoss expects log-probs
    target = jax.random.randint(k2, (N,), 1, V, jnp.int32)
    target = target.at[3].set(padding_idx)             # exercise target == padding_idx

    ref = _reference(x, target, size=V, padding_idx=padding_idx,
                     smoothing=smoothing)

    # f32 path, auto block size (even number of blocks -> 2 blocks of 32 rows).
    loss = label_smoothing_loss(
        x, target, size=V, padding_idx=padding_idx, smoothing=smoothing)
    jax.block_until_ready(loss)
    assert jnp.allclose(loss, ref, rtol=1e-5, atol=1e-3), (loss, ref)

    # Exercise the zero-row padding path (block_n=24 -> n padded 64 -> 72, 3 blocks).
    loss_pad = label_smoothing_loss(
        x, target, size=V, padding_idx=padding_idx, smoothing=smoothing,
        block_n=24)
    jax.block_until_ready(loss_pad)
    assert jnp.allclose(loss_pad, ref, rtol=1e-5, atol=1e-3), (loss_pad, ref)

    # bf16 fast path (halves the HBM read stream); looser tolerance.
    loss_bf16 = label_smoothing_loss(
        x, target, size=V, padding_idx=padding_idx, smoothing=smoothing,
        use_bf16=True)
    jax.block_until_ready(loss_bf16)
    assert jnp.allclose(loss_bf16, ref, rtol=2e-2, atol=1.0), (loss_bf16, ref)

    print("KERNEL_OK")
</pallas_src>

<mosaic_0001>
module attributes {stable_mosaic.version = 11 : i64} {
  func.func @_label_smoothing_kernel(%arg0: i32, %arg1: memref<32x1xi32, #tpu.memory_space<vmem>>, %arg2: memref<32x256xf32, #tpu.memory_space<vmem>>, %arg3: memref<8x128xf32, #tpu.memory_space<vmem>>) attributes {dimension_semantics = [#tpu.dimension_semantics<parallel>], iteration_bounds = array<i64: 2>, scalar_prefetch = 0 : i64, scratch_operands = 0 : i64, tpu.core_type = #tpu.core_type<tc>, window_params = [{transform_indices = @transform_0, window_bounds = array<i64: 32, 1>}, {transform_indices = @transform_1, window_bounds = array<i64: 32, 256>}, {transform_indices = @transform_2, window_bounds = array<i64: 8, 128>}]} {
    %c0 = arith.constant 0 : index
    %c0_0 = arith.constant 0 : index
    %0 = vector.load %arg2[%c0, %c0_0] : memref<32x256xf32, #tpu.memory_space<vmem>>, vector<32x256xf32>
    %c0_1 = arith.constant 0 : index
    %c0_2 = arith.constant 0 : index
    %1 = vector.load %arg1[%c0_1, %c0_2] : memref<32x1xi32, #tpu.memory_space<vmem>>, vector<32x1xi32>
    %2 = tpu.iota {dimensions = array<i32: 1>} : vector<1x256xi32>
    %c0_i32 = arith.constant 0 : i32
    %3 = vector.broadcast %c0_i32 : i32 to vector<1x256xi32>
    %4 = arith.cmpi eq, %2, %3 : vector<1x256xi32>
    %cst = arith.constant 0.000000e+00 : f32
    %cst_3 = arith.constant 3.93700786E-4 : f32
    %5 = vector.broadcast %cst : f32 to vector<1x256xf32>
    %6 = vector.broadcast %cst_3 : f32 to vector<1x256xf32>
    %7 = arith.select %4, %5, %6 : vector<1x256xi1>, vector<1x256xf32>
    %8 = vector.broadcast %2 : vector<1x256xi32> to vector<32x256xi32>
    %9 = vector.broadcast %1 : vector<32x1xi32> to vector<32x256xi32>
    %10 = arith.cmpi eq, %8, %9 : vector<32x256xi32>
    %cst_4 = arith.constant 0.899999976 : f32
    %11 = vector.broadcast %cst_4 : f32 to vector<32x256xf32>
    %12 = vector.shape_cast %7 : vector<1x256xf32> to vector<1x256xf32>
    %13 = vector.broadcast %12 : vector<1x256xf32> to vector<32x256xf32>
    %14 = arith.select %10, %11, %13 : vector<32x256xi1>, vector<32x256xf32>
    %15 = arith.mulf %14, %0 : vector<32x256xf32>
    %16 = vector.shape_cast %15 : vector<32x256xf32> to vector<4x8x256xf32>
    %cst_5 = arith.constant dense<0.000000e+00> : vector<8x256xf32>
    %17 = vector.multi_reduction <add>, %16, %cst_5 [0] : vector<4x8x256xf32> to vector<8x256xf32>
    %18 = vector.extract_strided_slice %17 {offsets = [0, 0], sizes = [8, 128], strides = [1, 1]} : vector<8x256xf32> to vector<8x128xf32>
    %19 = vector.extract_strided_slice %17 {offsets = [0, 128], sizes = [8, 128], strides = [1, 1]} : vector<8x256xf32> to vector<8x128xf32>
    %20 = arith.addf %18, %19 : vector<8x128xf32>
    %c0_6 = arith.constant 0 : index
    %c0_7 = arith.constant 0 : index
    %21 = vector.load %arg3[%c0_6, %c0_7] : memref<8x128xf32, #tpu.memory_space<vmem>>, vector<8x128xf32>
    tpu.vector_store %arg3[%c0_6, %c0_7], %20 {strides = array<i32>} : memref<8x128xf32, #tpu.memory_space<vmem>>, vector<8x128xf32>,
    return
  }
  func.func @transform_0(%arg0: i32) -> (i32, i32) {
    %c0_i32 = arith.constant 0 : i32
    %c0_i32_0 = arith.constant 0 : i32
    return %arg0, %c0_i32 : i32, i32
  }
  func.func @transform_1(%arg0: i32) -> (i32, i32) {
    %c0_i32 = arith.constant 0 : i32
    %c0_i32_0 = arith.constant 0 : i32
    return %arg0, %c0_i32 : i32, i32
  }
  func.func @transform_2(%arg0: i32) -> (i32, i32) {
    %c0_i32 = arith.constant 0 : i32
    %c0_i32_0 = arith.constant 0 : i32
    return %arg0, %c0_i32 : i32, i32
  }
}

</mosaic_0001>

<bundles_post_ra>
// kernel: tpu_custom_call.1
= control target key start
LH: loop header
LB: loop body
LE: loop exit
PB: predicated region body
PF: predicated region fallthrough
CT: control target
= control target key end

     0   :  { %7 = vsyncpa [#allocation3], 0  ;;  %s680_s0 = inlined_call_operand.vmem [shape: s32[64,1], index: 0, kind: input, shape index: {}]   ;;  %s681_s1 = inlined_call_operand.hbm [shape: f32[64,256], index: 1, kind: input, shape index: {}]   ;;  %s682_s2 = inlined_call_operand.hbm [shape: f32[16,128], index: 2, kind: output, shape index: {}]  }
   0x1   :  { %9 = vsyncpa [#allocation3 + $0x1], 0 }
   0x2   :  { %10 = vsyncpa [#allocation4], 0 }
   0x3   :  { %12 = vsyncpa [#allocation4 + $0x1], 0  ;;  %s536_s9 = smov 0   ;;  %s538_s10 = smov 0  }
   0x4   :  { %s540_s11 = smov 0   ;;  %s542_s12 = smov 0  }
   0x5 LB: > { %s557_s13 = sadd.s32 4294967295, %s515_s12   ;;  %s349_s14 = sadd.s32 4294967294, %s515_s12   ;;  %s515_s12 = sphi %s542_s12, %s692_s12   ;;  %s511_s11 = sphi %s540_s11, %s691_s11   ;;  %s507_s10 = sphi %s538_s10, %s690_s10   ;;  %s503_s9 = sphi %s536_s9, %s689_s9  }
   0x6   : > { %s561_s15 = sadd.s32 1, %s515_s12   ;;  %s51_s16 = sadd.s32 1, %s511_s11 }
   0x7   : > { %s48_s17 = ssub.s32 %s515_s12, %s561_s15  ;;  %p58_p0 = scmp.ne.s32.totalorder %s511_s11, %s507_s10 }
   0x8   : > { %p49_p1 = scmp.eq.s32.totalorder %s48_s17, 0  ;;  %p59_p2 = scmp.eq.s32.totalorder %s515_s12, 0 }
   0x9   : > { %p64_p3 = scmp.ne.s32.totalorder %s507_s10, %s503_s9  ;;  %p65_p4 = scmp.eq.s32.totalorder %s557_s13, 0 }
   0xa   : > { %s573_s18 = scalar_select %p49_p1, %s511_s11, %s51_s16  }
   0xb   : > { %p575_p5 = por %p59_p2, %p58_p0  ;;  %p579_p6 = por %p65_p4, %p64_p3 }
   0xc   : > { %p88_p7 = scmp.eq.s32.totalorder %s557_s13, 1  ;;  %p94_p8 = scmp.eq.s32.totalorder %s349_s14, 1 }
   0xd   : > { %p379_p10 = scmp.lt.s32.totalorder %s515_s12, 2  ;;  %s123_s23 = sand.u32 1, %s511_s11  }
   0xe   : > { %p586_p11 = por %p88_p7, %p58_p0  ;;  %p590_p12 = por %p94_p8, %p64_p3 }
   0xf   : > { %s366_s24 = sshll.u32 %s515_s12, 6  ;;  %s352_s25 = sshll.u32 %s123_s23, 6 }
  0x10   : > { %s133_s28 = scalar_lea.hbm %s681_s1, %s366_s24  ;;  %s127_s30 = scalar_lea.vmem [#allocation2], %s352_s25 }
  0x11   : > { %s134_s29 = sshll.u32 %s133_s28, 4  ;;  %s136_s3 = sshll.u32 %s127_s30, 4  ;;  %s135_s29 = int_to_ptr.hbm [resolvable:$true] %s134_s29  ;;  %s137_s3 = int_to_ptr.vmem [resolvable:$true] %s136_s3 }
  0x12   : > { %p601_p13 = pnand %p379_p10, %p575_p5  ;;  %p356_p0 = scmp.ge.s32.totalorder %s515_s12, 1 }
  0x13   : > { %p144_p1 = scmp.lt.s32.totalorder %s515_s12, 3  ;;  %s124_s5 = scalar_lea.sflag [#allocation3], %s123_s23 }
  0x14   : > { %s419_s6 = sshra.s32 %s135_s29, 4  ;;  %p423_p3 = pneg %p601_p13  ;;  %s420_s6 = int_to_ptr.hbm [resolvable:$true] %s419_s6 }
  0x15   : > { %s421_s7 = scalar_lea.hbm %s420_s6, 64  ;;  %s426_s16 = scalar_lea.hbm %s681_s1, 128 }
  0x16   : > { %p422_p2 = scmp.ne.s32.totalorder %s420_s6, %s421_s7  ;;  %p427_p5 = scmp.lt.s32.totalorder %s420_s6, %s681_s1 }
  0x17   : > { %p428_p8 = scmp.lt.s32.totalorder %s426_s16, %s421_s7 }
  0x18   : > { %p424_p4 = pnand %p423_p3, %p422_p2 }
  0x19   : > { %p429_p10 = por %p428_p8, %p427_p5 }
  0x1a   : > { %p425_p7 = pneg %p424_p4 }
  0x1c   : > { %p430_p9 = pnand %p429_p10, %p425_p7 }
  0x1e   : > { %433 = shalt.err (!%p430_p9)
}
  0x1f   : > { %s517_s23 = smov 256   ;;  %s518_s24 = smov 16  }
  0x20   : > { %374 = dma.hbm_to_vmem [thread:$0]  (!%p601_p13), %s135_s29, 1024, %s137_s3, %s124_s5, %s517_s23, %s517_s23, %s518_s24  }
  0x21   : > { %p145_p2 = pnand %p356_p0, %p144_p1 }
  0x22   : > { %s622_s25 = sand.u32 (!%p145_p2), 1, %s507_s10  }
  0x23   : > { %148 = sbr.rel (%p145_p2) target bundleno = 186 (0xba), region = 28  ;;  %s357_s26 = sshll.u32 (!%p145_p2), %s622_s25, 6 }
  0x24   : > { %s151_s27 = scalar_lea.sflag (!%p145_p2), [#allocation3], %s622_s25  ;;  %s626_s28 = scalar_lea.vmem (!%p145_p2), [#allocation2], %s357_s26 }
  0x28   : > { %494 = dma.done.wait (%p579_p6), %s151_s27, 1024  }
  0x29   : > { %496 = vsyncadd (%p579_p6), %s151_s27, 4294966272  ;;  %s359_s29 = sshll.u32 %s557_s13, 2  ;;  %v519_v0 = vmov 0   ;;  %v200_v5 = vlaneseq  ;;  %v520_v10 = vmov 0.0003937008   ;;  %v188_v12 = vld [vmem:[%s626_s28] sm:$0xff] }
  0x2a   : > { %418 = vset.pattern.permute.xlu1 %v519_v0  ;;  %417 = vset.pattern.permute.xlu0 %v519_v0  ;;  %p182_p9 = scmp.lt.s32.totalorder %s359_s29, 7  ;;  %v190_v16 = vld [vmem:[%s626_s28 + $0x10] sm:$0xff]  ;;  %v189_v17 = vld [vmem:[%s626_s28 + $0x8] sm:$0xff]  ;;  %v191_v19 = vld [vmem:[%s626_s28 + $0x18] sm:$0xff]  ;;  %s358_s20 = sshll.u32 %s622_s25, 3 }
  0x2b   : > { %v201_v6 = vand.u32 127, %v200_v5  ;;  %v192_v20 = vld [vmem:[%s626_s28 + $0x20] sm:$0xff]  ;;  %v193_v23 = vld [vmem:[%s626_s28 + $0x28] sm:$0xff]  ;;  %s362_s6 = sshll.u32 %s557_s13, 3  ;;  %v194_v29 = vld [vmem:[%s626_s28 + $0x30] sm:$0xff]  ;;  %s180_s13 = scalar_lea.vmem [#allocation5], %s358_s20 }
  0x2c   : > { %s694_s29 = smov (!%p182_p9, %s359_s29), 7  ;;  %v195_v33 = vld [vmem:[%s626_s28 + $0x38] sm:$0xff]  ;;  %s262_s14 = scalar_lea.hbm %s682_s2, %s362_s6 }
  0x2d   : > { %s360_s30 = sshll.u32 %s694_s29, 3  ;;  %v202_v9 = vadd.s32 128, %v201_v6  ;;  %vm203_vm0 = vcmp.eq.s32.totalorder %v201_v6, 0  ;;  %s264_s16 = sshll.u32 %s180_s13, 4  ;;  %s265_s16 = int_to_ptr.vmem [resolvable:$true] %s264_s16 }
  0x2e   : > { %s185_s5 = scalar_lea.vmem %s680_s0, %s360_s30  ;;  %v205_v11 = vsel %vm203_vm0, 0.0, %v520_v10  ;;  %s266_s17 = sshll.u32 %s262_s14, 4  ;;  %s267_s17 = int_to_ptr.hbm [resolvable:$true] %s266_s17 }
  0x2f   : > { %v198_v1 = vld [vmem:[%s185_s5 + $0x10] sm:$0xff]  ;;  %v196_v2 = vld [vmem:[%s185_s5] sm:$0xff]  ;;  %v199_v3 = vld [vmem:[%s185_s5 + $0x18] sm:$0xff]  ;;  %s252_s19 = scalar_lea.sflag [#allocation4], %s622_s25  ;;  %s463_s23 = sshra.s32 %s267_s17, 4  ;;  %s464_s23 = int_to_ptr.hbm [resolvable:$true] %s463_s23 }
  0x30   : > { %214 = vperm.xlu1 %418, %v198_v1   ;;  %208 = vperm.xlu0 %417, %v196_v2   ;;  %v197_v4 = vld [vmem:[%s185_s5 + $0x8] sm:$0xff]  ;;  %s465_s24 = scalar_lea.hbm %s464_s23, 8  ;;  %s469_s28 = scalar_lea.hbm %s682_s2, 16 }
  0x31   : > { %p466_p6 = scmp.ne.s32.totalorder %s464_s23, %s465_s24  ;;  %p470_p1 = scmp.lt.s32.totalorder %s464_s23, %s682_s2 }
  0x32   : > { %p471_p3 = scmp.lt.s32.totalorder %s469_s28, %s465_s24 }
  0x33   : > { %p467_p13 = pnand %p466_p6, %p586_p11 }
  0x34   : > { %p472_p4 = por %p471_p3, %p470_p1 }
  0x35   : > { %p468_p0 = pneg %p467_p13 }
  0x37   : > { %p473_p7 = pnand %p472_p4, %p468_p0 }
  0x38   : > { %217 = vperm.xlu1 %418, %v199_v3   ;;  %211 = vperm.xlu0 %417, %v197_v4  }
  0xa2   : > { %v215_v7 = vpop.permute.xlu1 %214  ;;  %v209_v8 = vpop.permute.xlu0 %208 }
  0xa3   : > { %vm219_vm1 = vcmp.eq.s32.totalorder %v201_v6, %v209_v8  ;;  %vm220_vm2 = vcmp.eq.s32.totalorder %v202_v9, %v209_v8  ;;  %vm223_vm3 = vcmp.eq.s32.totalorder %v201_v6, %v215_v7  ;;  %vm224_vm4 = vcmp.eq.s32.totalorder %v202_v9, %v215_v7 }
  0xa4   : > { %v227_v13 = vsel %vm219_vm1, 0.9, %v205_v11  ;;  %v228_v18 = vsel %vm220_vm2, 0.9, %v520_v10  ;;  %v231_v21 = vsel %vm223_vm3, 0.9, %v205_v11 }
  0xa5   : > { %v232_v24 = vsel %vm224_vm4, 0.9, %v520_v10  ;;  %v235_v25 = vmul.f32 %v227_v13, %v188_v12  ;;  %v236_v28 = vmul.f32 %v228_v18, %v189_v17  ;;  %v239_v32 = vmul.f32 %v231_v21, %v192_v20 }
  0xa6   : > { %v240_v36 = vmul.f32 %v232_v24, %v193_v23 }
  0xaa   : > { %v218_v14 = vpop.permute.xlu1 %217  ;;  %v212_v15 = vpop.permute.xlu0 %211 }
  0xab   : > { %vm225_vm5 = vcmp.eq.s32.totalorder %v201_v6, %v218_v14  ;;  %vm221_vm6 = vcmp.eq.s32.totalorder %v201_v6, %v212_v15  ;;  %vm222_vm7 = vcmp.eq.s32.totalorder %v202_v9, %v212_v15  ;;  %vm226_vm8 = vcmp.eq.s32.totalorder %v202_v9, %v218_v14 }
  0xac   : > { %v229_v22 = vsel %vm221_vm6, 0.9, %v205_v11  ;;  %v230_v26 = vsel %vm222_vm7, 0.9, %v520_v10  ;;  %v233_v30 = vsel %vm225_vm5, 0.9, %v205_v11 }
  0xad   : > { %v237_v27 = vmul.f32 %v229_v22, %v190_v16  ;;  %v238_v31 = vmul.f32 %v230_v26, %v191_v19  ;;  %v234_v34 = vsel %vm226_vm8, 0.9, %v520_v10  ;;  %v241_v38 = vmul.f32 %v233_v30, %v194_v29 }
  0xae   : > { %v242_v40 = vmul.f32 %v234_v34, %v195_v33 }
  0xaf   : > { %v243_v35 = vadd.f32 %v237_v27, %v235_v25  ;;  %v246_v37 = vadd.f32 %v238_v31, %v236_v28 }
  0xb1   : > { %v244_v39 = vadd.f32 %v243_v35, %v239_v32  ;;  %v247_v41 = vadd.f32 %v246_v37, %v240_v36 }
  0xb3   : > { %v245_v42 = vadd.f32 %v244_v39, %v241_v38  ;;  %v248_v43 = vadd.f32 %v247_v41, %v242_v40 }
  0xb5   : > { %v249_v44 = vadd.f32 %v248_v43, %v245_v42 }
  0xb7   : > { %250 = vst [vmem:[%s180_s13] sm:$0xff] %v249_v44 }
  0xb8   : > { %476 = shalt.err (!%p473_p7)
}
  0xb9   : > { %369 = dma.vmem_to_hbm [thread:$0]  (%p586_p11), %s265_s16, 128, %s267_s17, %s252_s19  }
  0xba PF: > { %s278_s25 = sand.u32 1, %s503_s9   ;;  %p688_p5 = scmp.ge.s32.totalorder %s515_s12, 2 }
  0xbb   : > { %s279_s3 = scalar_lea.sflag [#allocation4], %s278_s25 }
  0xbc   : > { %p376_p8 = pnand %p688_p5, %p590_p12 }
  0xbe   : > { %p377_p10 = pneg %p376_p8 }
  0xc0   : > { %498 = dma.done.wait (%p377_p10), %s279_s3, 128  }
  0xc1   : > { %500 = vsyncadd (%p377_p10), %s279_s3, 4294967168  ;;  %p15_p2 = scmp.ge.s32.totalorder %s561_s15, 4   ;;  %s689_s9 = smov %s507_s10 }
  0xc2   : > { %s690_s10 = smov %s511_s11  ;;  %s691_s11 = smov %s573_s18 }
  0xc3   : > { %s692_s12 = smov %s561_s15  ;;  %17 = sbr.rel (!%p15_p2) target bundleno = 5 (0x5), region = 76 }
  0xc8   :  { %285 = vsyncpa [#allocation3], 1 }
  0xc9   :  { %287 = vsyncpa [#allocation3 + $0x1], 1 }
  0xca   :  { %288 = vsyncpa [#allocation4], 1 }
  0xcb   :  { %290 = vsyncpa [#allocation4 + $0x1], 1 }

</bundles_post_ra>
